<compile_context>
chip_gen: v7x
topology: tpu7x:2x2x1
jax: 0.10.0
libtpu: 0.0.40
codegen_flags: <defaults>
</compile_context>

<pallas_src>
import jax
import jax.numpy as jnp
from jax.experimental import pallas as pl
from jax.experimental.pallas import tpu as pltpu


# -----------------------------------------------------------------------------
# Fused Pallas kernel: BN + grouped conv1d(k=3, same) + Mish + mixed pool + Linear
# -----------------------------------------------------------------------------
def _fused_kernel(feats_ref, ew_ref, lin_ref, o_ref):
    """Whole forward pass for the full (tiny) batch in one kernel invocation.

    feats_ref: (B*T, F)  packed features, columns = [cat embeddings | raw
                         continuous, each channel replicated E times (conv
                         output-channel order)]
    ew_ref:    (6, F)    packed per-column elementwise params, rows =
                         [BN scale, BN shift, tap x[t-1], tap x[t], tap x[t+1],
                         conv bias]; identity values on the cat columns.
    lin_ref:   (F+1, O)  linear W.T (first F rows) + bias (last row)
    o_ref:     (B, O)    predictions
    """
    BT, F = feats_ref.shape
    B, O = o_ref.shape
    T = BT // B

    x = feats_ref[...]                                  # (B*T, F)
    ew = ew_ref[...]                                    # (6, F)
    scale, shift = ew[0:1, :], ew[1:2, :]
    w_prev, w_cur, w_next, cbias = ew[2:3, :], ew[3:4, :], ew[4:5, :], ew[5:6, :]

    # Eval BatchNorm (identity on categorical columns).
    xn = x * scale + shift                              # (B*T, F)

    # k=3 'same' conv taps: XLU sublane rolls + per-batch boundary masking
    # (zero padding is applied AFTER BN, matching Conv1d(padding=1) on BN out).
    prev = pltpu.roll(xn, 1, 0)                         # row i <- row i-1 (wraps)
    nxt = pltpu.roll(xn, BT - 1, 0)                     # row i <- row i+1 (wraps)
    tt = jax.lax.broadcasted_iota(jnp.int32, (B, T, F), 1)
    not_first = (tt > 0).astype(xn.dtype).reshape(BT, F)      # 0 at t == 0
    not_last = (tt < T - 1).astype(xn.dtype).reshape(BT, F)   # 0 at t == T-1
    conv = (cbias + w_prev * (prev * not_first)
            + w_cur * xn + w_next * (nxt * not_last))   # (B*T, F)

    # Mish via a single exp:  tanh(softplus(v)) == n / (n + 2),  n = e^v (e^v + 2).
    # Keep the torch softplus-threshold (=20) passthrough for large v.
    e = jnp.exp(jnp.minimum(conv, 20.0))
    n = e * (e + 2.0)
    act = jnp.where(conv > 20.0, conv,
                    conv * n * pl.reciprocal(n + 2.0, approx=True))

    # GlobalMixedPooling per batch segment: (B*T,F) -> view (B,T,F) -> (B,F).
    m3 = act.reshape(B, T, F)
    pooled = 0.5 * (jnp.max(m3, axis=1) + jnp.sum(m3, axis=1) * (1.0 / T))

    # Single MXU issue for the head Linear; bias packed as the last weight row.
    lin = lin_ref[...]                                  # (F+1, O)
    y = jnp.dot(pooled, lin[:F, :], preferred_element_type=jnp.float32) + lin[F:, :]
    o_ref[...] = y                                      # single dense (B, O) store


def fused_forward(feats, ew_params, lin, batch_size, output_size):
    # No grid: one pipeline step, every (tiny) operand fully resident in VMEM.
    # TODO(synk): when B / seq_len scale, add a grid over B with
    # dimension_semantics=("parallel",) and an explicit vmem_limit_bytes,
    # budgeting tiles against v7x's 64 MiB physical VMEM (half of v5e/v6e).
    return pl.pallas_call(
        _fused_kernel,
        out_shape=jax.ShapeDtypeStruct((batch_size, output_size), jnp.float32),
    )(feats, ew_params, lin)


# -----------------------------------------------------------------------------
# Full model forward (glue in plain JAX, all heavy lifting in the fused kernel)
# -----------------------------------------------------------------------------
def flexible_stumb_forward(batch, params, cat_cardinalities, continious, seq_len):
    eps = 1e-5
    # --- Stem: categorical embeddings kept in plain JAX glue ---
    # TODO(synk): embedding-table gather has no clean small-shape Pallas path; kept in XLA.
    cat_feats = jnp.concatenate(
        [params["emb_tables"][name][batch[name]] for name, _ in cat_cardinalities],
        axis=-1).astype(jnp.float32)                                  # (B, T, Fcat)

    x_raw = jnp.stack([batch[name] for name in continious], axis=-1)  # (B, T, C)
    B, T, C = x_raw.shape
    E = params["conv_w"].shape[0] // C
    CE = C * E
    Fcat = cat_feats.shape[-1]
    F = Fcat + CE
    O = params["lin_w"].shape[0]

    # One packed (B*T, F) slab: cat columns first (as the model concatenates),
    # then continuous channels replicated E times in conv output-channel order.
    # TODO(synk): at large B*T move the E-fold replication in-kernel to cut HBM
    # DMA bytes by E; at these shapes host-side packing is cheaper.
    x_exp = jnp.repeat(x_raw, E, axis=-1).astype(jnp.float32)         # (B, T, CE)
    feats = jnp.concatenate([cat_feats, x_exp], axis=-1).reshape(B * T, F)

    # Packed elementwise params (6, F); identity values on the cat columns so
    # BN + conv act as identity there.
    ones_cat = jnp.ones((Fcat,), jnp.float32)
    zeros_cat = jnp.zeros((Fcat,), jnp.float32)
    scale_c = params["bn_gamma"] / jnp.sqrt(params["bn_var"] + eps)   # (C,)
    shift_c = params["bn_beta"] - params["bn_mean"] * scale_c
    w = params["conv_w"][:, 0, :]                                     # (CE, 3)
    ew = jnp.stack([
        jnp.concatenate([ones_cat, jnp.repeat(scale_c, E)]),          # BN scale
        jnp.concatenate([zeros_cat, jnp.repeat(shift_c, E)]),         # BN shift
        jnp.concatenate([zeros_cat, w[:, 0]]),                        # tap x[t-1]
        jnp.concatenate([ones_cat, w[:, 1]]),                         # tap x[t]
        jnp.concatenate([zeros_cat, w[:, 2]]),                        # tap x[t+1]
        jnp.concatenate([zeros_cat, params["conv_b"]]),               # conv bias
    ], axis=0).astype(jnp.float32)                                    # (6, F)

    # Linear packed as W.T rows + bias row -> one operand, one dot in-kernel.
    lin = jnp.concatenate([params["lin_w"].T, params["lin_b"][None, :]],
                          axis=0).astype(jnp.float32)                 # (F+1, O)

    # F.pad(..., seq_len - T) is a no-op here (T == seq_len); aug is None.
    preds = fused_forward(feats, ew, lin, B, O)                       # (B, O)
    return {"preds": preds}


# Pure-jnp reference mirroring the PyTorch forward (for correctness check).
def reference_forward(batch, params, cat_cardinalities, continious, seq_len):
    eps = 1e-5
    cat_feats = [params["emb_tables"][name][batch[name]]
                 for name, _ in cat_cardinalities]
    x = jnp.stack([batch[name] for name in continious], axis=1)       # (B, C, T)
    B, C, T = x.shape
    xn = (x - params["bn_mean"][None, :, None]) / jnp.sqrt(
        params["bn_var"][None, :, None] + eps)
    xn = xn * params["bn_gamma"][None, :, None] + params["bn_beta"][None, :, None]
    xp = jnp.pad(xn, ((0, 0), (0, 0), (1, 1)))
    E = params["conv_w"].shape[0] // C
    gidx = jnp.repeat(jnp.arange(C), E)                                # out ch -> in ch
    out = params["conv_b"][None, :, None]
    for k in range(3):
        out = out + params["conv_w"][:, 0, k][None, :, None] * xp[:, gidx, k:k + T]
    lin_feat = jnp.transpose(out, (0, 2, 1))                           # (B, T, C*E)
    feats = jnp.concatenate(cat_feats + [lin_feat], axis=2)
    sp = jnp.where(feats > 20.0, feats,
                   jnp.log(1.0 + jnp.exp(jnp.minimum(feats, 20.0))))
    m = feats * jnp.tanh(sp)
    pooled = 0.5 * (jnp.max(m, axis=1) + jnp.mean(m, axis=1))
    return pooled @ params["lin_w"].T + params["lin_b"]


# -----------------------------------------------------------------------------
if __name__ == "__main__":
    key = jax.random.PRNGKey(0)
    B, T, O = 2, 16, 5
    cat_cardinalities = [("cat_a", 7), ("cat_b", 11)]
    continious = ["num_x", "num_y", "num_z"]
    EMB = 4                          # embeddings_hidden (explicit int)
    C = len(continious)
    E = EMB                          # num_embeddings_hidden='auto' -> mean(cat emb sizes) = 4
    F = EMB * len(cat_cardinalities) + E * C                           # 8 + 12 = 20

    keys = jax.random.split(key, 16)
    # --- deterministic parameters (module __init__ shapes) ---
    emb_tables = {
        name: 0.1 * jax.random.normal(k, (size + 1, EMB), jnp.float32)
        for (name, size), k in zip(cat_cardinalities, keys[:2])
    }
    params = dict(
        emb_tables=emb_tables,
        bn_gamma=1.0 + 0.1 * jax.random.normal(keys[2], (C,), jnp.float32),
        bn_beta=0.1 * jax.random.normal(keys[3], (C,), jnp.float32),
        bn_mean=0.1 * jax.random.normal(keys[4], (C,), jnp.float32),
        bn_var=1.0 + 0.1 * jax.random.uniform(keys[5], (C,), jnp.float32),
        conv_w=0.2 * jax.random.normal(keys[6], (C * E, 1, 3), jnp.float32),
        conv_b=0.1 * jax.random.normal(keys[7], (C * E,), jnp.float32),
        lin_w=0.2 * jax.random.normal(keys[8], (O, F), jnp.float32),
        lin_b=0.1 * jax.random.normal(keys[9], (O,), jnp.float32),
    )

    # --- deterministic example batch (dict of per-feature (B, T) arrays) ---
    batch = {}
    for (name, size), k in zip(cat_cardinalities, keys[10:12]):
        batch[name] = jax.random.randint(k, (B, T), 0, size + 1, jnp.int32)
    for name, k in zip(continious, jax.random.split(keys[12], C)):
        batch[name] = jax.random.normal(k, (B, T), jnp.float32)

    out = flexible_stumb_forward(batch, params, cat_cardinalities, continious, T)
    preds = jax.block_until_ready(out["preds"])

    ref = reference_forward(batch, params, cat_cardinalities, continious, T)
    assert preds.shape == (B, O)
    # Tolerance is slightly loose because the kernel's single-exp Mish uses the
    # EUP approximate reciprocal (vs. exact exp/log/tanh in the reference).
    assert jnp.allclose(preds, ref, rtol=1e-3, atol=1e-3), (preds, ref)
    print("KERNEL_OK")
</pallas_src>

<mosaic_0001>
module attributes {stable_mosaic.version = 11 : i64} {
  func.func @_fused_kernel(%arg0: memref<32x20xf32, #tpu.memory_space<vmem>>, %arg1: memref<6x20xf32, #tpu.memory_space<vmem>>, %arg2: memref<21x5xf32, #tpu.memory_space<vmem>>, %arg3: memref<2x5xf32, #tpu.memory_space<vmem>>) attributes {dimension_semantics = [], scalar_prefetch = 0 : i64, scratch_operands = 0 : i64, tpu.core_type = #tpu.core_type<tc>} {
    %c0 = arith.constant 0 : index
    %c0_0 = arith.constant 0 : index
    %0 = vector.load %arg0[%c0, %c0_0] : memref<32x20xf32, #tpu.memory_space<vmem>>, vector<32x20xf32>
    %c0_1 = arith.constant 0 : index
    %c0_2 = arith.constant 0 : index
    %1 = vector.load %arg1[%c0_1, %c0_2] : memref<6x20xf32, #tpu.memory_space<vmem>>, vector<6x20xf32>
    %2 = vector.extract_strided_slice %1 {offsets = [0, 0], sizes = [1, 20], strides = [1, 1]} : vector<6x20xf32> to vector<1x20xf32>
    %3 = vector.extract_strided_slice %1 {offsets = [1, 0], sizes = [1, 20], strides = [1, 1]} : vector<6x20xf32> to vector<1x20xf32>
    %4 = vector.extract_strided_slice %1 {offsets = [2, 0], sizes = [1, 20], strides = [1, 1]} : vector<6x20xf32> to vector<1x20xf32>
    %5 = vector.extract_strided_slice %1 {offsets = [3, 0], sizes = [1, 20], strides = [1, 1]} : vector<6x20xf32> to vector<1x20xf32>
    %6 = vector.extract_strided_slice %1 {offsets = [4, 0], sizes = [1, 20], strides = [1, 1]} : vector<6x20xf32> to vector<1x20xf32>
    %7 = vector.extract_strided_slice %1 {offsets = [5, 0], sizes = [1, 20], strides = [1, 1]} : vector<6x20xf32> to vector<1x20xf32>
    %8 = vector.broadcast %2 : vector<1x20xf32> to vector<32x20xf32>
    %9 = arith.mulf %0, %8 : vector<32x20xf32>
    %10 = vector.broadcast %3 : vector<1x20xf32> to vector<32x20xf32>
    %11 = arith.addf %9, %10 : vector<32x20xf32>
    %c1_i32 = arith.constant 1 : i32
    %12 = tpu.dynamic_rotate %11 by %c1_i32 dim 0 : vector<32x20xf32>, i32 -> vector<32x20xf32>
    %c31_i32 = arith.constant 31 : i32
    %13 = tpu.dynamic_rotate %11 by %c31_i32 dim 0 : vector<32x20xf32>, i32 -> vector<32x20xf32>
    %14 = tpu.iota {dimensions = array<i32: 1>} : vector<2x16x20xi32>
    %c0_i32 = arith.constant 0 : i32
    %15 = vector.broadcast %c0_i32 : i32 to vector<2x16x20xi32>
    %16 = arith.cmpi sgt, %14, %15 : vector<2x16x20xi32>
    %17 = arith.extui %16 : vector<2x16x20xi1> to vector<2x16x20xi32>
    %18 = arith.sitofp %17 : vector<2x16x20xi32> to vector<2x16x20xf32>
    %19 = vector.shape_cast %18 : vector<2x16x20xf32> to vector<32x20xf32>
    %c15_i32 = arith.constant 15 : i32
    %20 = vector.broadcast %c15_i32 : i32 to vector<2x16x20xi32>
    %21 = arith.cmpi slt, %14, %20 : vector<2x16x20xi32>
    %22 = arith.extui %21 : vector<2x16x20xi1> to vector<2x16x20xi32>
    %23 = arith.sitofp %22 : vector<2x16x20xi32> to vector<2x16x20xf32>
    %24 = vector.shape_cast %23 : vector<2x16x20xf32> to vector<32x20xf32>
    %25 = arith.mulf %12, %19 : vector<32x20xf32>
    %26 = vector.broadcast %4 : vector<1x20xf32> to vector<32x20xf32>
    %27 = arith.mulf %26, %25 : vector<32x20xf32>
    %28 = vector.broadcast %7 : vector<1x20xf32> to vector<32x20xf32>
    %29 = arith.addf %28, %27 : vector<32x20xf32>
    %30 = vector.broadcast %5 : vector<1x20xf32> to vector<32x20xf32>
    %31 = arith.mulf %30, %11 : vector<32x20xf32>
    %32 = arith.addf %29, %31 : vector<32x20xf32>
    %33 = arith.mulf %13, %24 : vector<32x20xf32>
    %34 = vector.broadcast %6 : vector<1x20xf32> to vector<32x20xf32>
    %35 = arith.mulf %34, %33 : vector<32x20xf32>
    %36 = arith.addf %32, %35 : vector<32x20xf32>
    %cst = arith.constant 2.000000e+01 : f32
    %37 = vector.broadcast %cst : f32 to vector<32x20xf32>
    %38 = arith.minimumf %36, %37 : vector<32x20xf32>
    %39 = math.exp %38 : vector<32x20xf32>
    %cst_3 = arith.constant 2.000000e+00 : f32
    %40 = vector.broadcast %cst_3 : f32 to vector<32x20xf32>
    %41 = arith.addf %39, %40 : vector<32x20xf32>
    %42 = arith.mulf %39, %41 : vector<32x20xf32>
    %cst_4 = arith.constant 2.000000e+01 : f32
    %43 = vector.broadcast %cst_4 : f32 to vector<32x20xf32>
    %44 = arith.cmpf ogt, %36, %43 : vector<32x20xf32>
    %45 = arith.mulf %36, %42 : vector<32x20xf32>
    %cst_5 = arith.constant 2.000000e+00 : f32
    %46 = vector.broadcast %cst_5 : f32 to vector<32x20xf32>
    %47 = arith.addf %42, %46 : vector<32x20xf32>
    %48 = tpu.reciprocal %47 {approx = true} : vector<32x20xf32> -> vector<32x20xf32>
    %49 = arith.mulf %45, %48 : vector<32x20xf32>
    %50 = arith.select %44, %36, %49 : vector<32x20xi1>, vector<32x20xf32>
    %51 = vector.shape_cast %50 : vector<32x20xf32> to vector<2x16x20xf32>
    %cst_6 = arith.constant dense<0xFF800000> : vector<2x20xf32>
    %52 = vector.multi_reduction <maximumf>, %51, %cst_6 [1] : vector<2x16x20xf32> to vector<2x20xf32>
    %cst_7 = arith.constant dense<0.000000e+00> : vector<2x20xf32>
    %53 = vector.multi_reduction <add>, %51, %cst_7 [1] : vector<2x16x20xf32> to vector<2x20xf32>
    %cst_8 = arith.constant 6.250000e-02 : f32
    %54 = vector.broadcast %cst_8 : f32 to vector<2x20xf32>
    %55 = arith.mulf %53, %54 : vector<2x20xf32>
    %56 = arith.addf %52, %55 : vector<2x20xf32>
    %cst_9 = arith.constant 5.000000e-01 : f32
    %57 = vector.broadcast %cst_9 : f32 to vector<2x20xf32>
    %58 = arith.mulf %57, %56 : vector<2x20xf32>
    %c0_10 = arith.constant 0 : index
    %c0_11 = arith.constant 0 : index
    %59 = vector.load %arg2[%c0_10, %c0_11] : memref<21x5xf32, #tpu.memory_space<vmem>>, vector<21x5xf32>
    %60 = vector.extract_strided_slice %59 {offsets = [0, 0], sizes = [20, 5], strides = [1, 1]} : vector<21x5xf32> to vector<20x5xf32>
    %cst_12 = arith.constant dense<0.000000e+00> : vector<2x5xf32>
    %61 = tpu.matmul %58, %60, %cst_12 {dimension_numbers = #tpu.dot_dimension_numbers<[1], [0], [0], [1], [0, 0, 1, 1], [], []>} : vector<2x20xf32>, vector<20x5xf32>, vector<2x5xf32> -> vector<2x5xf32>
    %62 = vector.extract_strided_slice %59 {offsets = [20, 0], sizes = [1, 5], strides = [1, 1]} : vector<21x5xf32> to vector<1x5xf32>
    %63 = vector.broadcast %62 : vector<1x5xf32> to vector<2x5xf32>
    %64 = arith.addf %61, %63 : vector<2x5xf32>
    %c0_13 = arith.constant 0 : index
    %c0_14 = arith.constant 0 : index
    %65 = vector.load %arg3[%c0_13, %c0_14] : memref<2x5xf32, #tpu.memory_space<vmem>>, vector<2x5xf32>
    tpu.vector_store %arg3[%c0_13, %c0_14], %64 {strides = array<i32>} : memref<2x5xf32, #tpu.memory_space<vmem>>, vector<2x5xf32>,
    return
  }
}

</mosaic_0001>

<bundles_post_ra>
// kernel: tpu_custom_call.1
= control target key start
LH: loop header
LB: loop body
LE: loop exit
PB: predicated region body
PF: predicated region fallthrough
CT: control target
= control target key end

     0   :  { %v20_v2 = vlaneseq  ;;  %v371_v3 = vmov 0.0|0.0   ;;  %vm372_vm0 = vmmov 0   ;;  %v373_v6 = vmov 0.0   ;;  %s452_s0 = inlined_call_operand.vmem [shape: f32[32,20], index: 0, kind: input, shape index: {}]   ;;  %s453_s1 = inlined_call_operand.vmem [shape: f32[6,20], index: 1, kind: input, shape index: {}]   ;;  %s454_s2 = inlined_call_operand.vmem [shape: f32[21,5], index: 2, kind: input, shape index: {}]   ;;  %s455_s3 = inlined_call_operand.hbm [shape: f32[2,5], index: 3, kind: output, shape index: {}]  }
   0x1   :  { %v204_v0 = vld [vmem:[%s454_s2] sm:$0xff]  ;;  %v205_v1 = vld [vmem:[%s454_s2 + $0x8] sm:$0xff]  ;;  %324 = vmatprep.subr.bf16.mxu0 %v371_v3  ;;  %321 = vmatprep.mubr.msk.f32.mxu0 %vm372_vm0, %v373_v6 }
   0x2   :  { %v325_v4 = vpack.c.bf16 %v205_v1, %v204_v0  ;;  %v21_v5 = vshrl.u32 %v20_v2, 7  ;;  %v19_v7 = vld [vmem:[%s453_s1] sm:$0x3f] }
   0x4   :  { %326 = vmatpush3.bf16.msra.mxu0 %v325_v4 }
   0x5   :  { %8 = vsyncpa [#allocation3], 0  ;;  %v15_v8 = vld [vmem:[%s452_s0] sm:$0xff]  ;;  %v22_v9 = vsub.s32 0, %v21_v5  ;;  %v30_v10 = vsub.s32 1, %v21_v5  ;;  %319 = vmatprep.subr.mxu0 %v373_v6  ;;  %vm217_vm1 = vcmask 1043456  }
   0x6   :  { %v206_v11 = vld [vmem:[%s454_s2 + $0x10] sm:$0x1f]  ;;  %v16_v12 = vld [vmem:[%s452_s0 + $0x8] sm:$0xff]  ;;  %v18_v14 = vld [vmem:[%s452_s0 + $0x18] sm:$0xff]  ;;  %v56_v15 = vadd.s32 8, %v21_v5  ;;  %v75_v16 = vsub.s32 2, %v21_v5 }
   0x7   :  { %v17_v13 = vld [vmem:[%s452_s0 + $0x10] sm:$0xff]  ;;  %v23_v17 = vrot.slane %v19_v7, %v22_v9  ;;  %v31_v18 = vrot.slane %v19_v7, %v30_v10  ;;  %vm42_vm2 = vcmp.lt.s32.totalorder %v21_v5, 1  ;;  %vm57_vm3 = vcmp.gt.s32.totalorder %v21_v5, 0  ;;  %s374_s0 = smov [#allocation2]  }
   0x8   :  { %vm64_vm4 = vcmp.lt.s32.totalorder %v56_v15, 15  ;;  %v83_v19 = vsub.s32 5, %v21_v5  ;;  %v91_v20 = vsub.s32 3, %v21_v5  ;;  %v107_v21 = vsub.s32 4, %v21_v5  ;;  %320 = vmatpush3.msk.msra.mxu0 %vm217_vm1, %v206_v11  ;;  %s299_s2 = sshll.u32 %s374_s0, 4  ;;  %s300_s2 = int_to_ptr.vmem [resolvable:$true] %s299_s2 }
   0x9   :  { %v24_v22 = vmul.f32 %v23_v17, %v15_v8  ;;  %v25_v23 = vmul.f32 %v23_v17, %v16_v12  ;;  %v26_v24 = vmul.f32 %v23_v17, %v17_v13  ;;  %v27_v25 = vmul.f32 %v23_v17, %v18_v14  ;;  %s347_s27 = scalar_lea.vmem %s300_s2, 32  ;;  %p352_p1 = scmp.lt.s32.totalorder %s300_s2, %s300_s2 }
   0xa   :  { %vm51_vm5 = vcmp.lt.s32.totalorder %v21_v5, 7  ;;  %v307_v26 = vsel %vm57_vm3, 1.0, %v373_v6  ;;  %v76_v27 = vrot.slane %v19_v7, %v75_v16  ;;  %v419_v28 = vrot.slane %v206_v11, %v107_v21  ;;  %p348_p0 = scmp.ne.s32.totalorder %s300_s2, %s347_s27  ;;  %p353_p2 = scmp.lt.s32.totalorder %s347_s27, %s347_s27 }
   0xb   :  { %v32_v29 = vadd.f32 %v31_v18, %v24_v22  ;;  %v33_v30 = vadd.f32 %v31_v18, %v25_v23  ;;  %v34_v31 = vadd.f32 %v31_v18, %v26_v24  ;;  %v35_v32 = vadd.f32 %v31_v18, %v27_v25 }
   0xc   :  { %v308_v33 = vsel %vm64_vm4, 1.0, %v373_v6  ;;  %v84_v34 = vrot.slane %v19_v7, %v83_v19  ;;  %v92_v35 = vrot.slane %v19_v7, %v91_v20  ;;  %v108_v36 = vrot.slane %v19_v7, %v107_v21  ;;  %p354_p3 = por %p353_p2, %p352_p1 }
   0xd   :  { %v36_v37 = vrot.slane %v32_v29, 7  ;;  %v37_v38 = vrot.slane %v33_v30, 7  ;;  %v38_v39 = vrot.slane %v34_v31, 7  ;;  %v39_v40 = vrot.slane %v35_v32, 7 }
   0xe   :  { %v47_v41 = vrot.slane %v32_v29, 1  ;;  %v48_v42 = vrot.slane %v33_v30, 1  ;;  %v49_v43 = vrot.slane %v34_v31, 1  ;;  %v50_v44 = vrot.slane %v35_v32, 1  ;;  %p355_p4 = pnand %p354_p3, %p348_p0 }
   0xf   :  { %v43_v45 = vsel %vm42_vm2, %v38_v39, %v39_v40  ;;  %v44_v46 = vsel %vm42_vm2, %v37_v38, %v38_v39  ;;  %v45_v47 = vsel %vm42_vm2, %v36_v37, %v37_v38  ;;  %v46_v48 = vsel %vm42_vm2, %v39_v40, %v36_v37 }
  0x10   :  { %v52_v49 = vsel %vm51_vm5, %v49_v43, %v50_v44  ;;  %v53_v50 = vsel %vm51_vm5, %v48_v42, %v49_v43  ;;  %v54_v51 = vsel %vm51_vm5, %v47_v41, %v48_v42  ;;  %v55_v52 = vsel %vm51_vm5, %v50_v44, %v47_v41 }
  0x11   :  { %v69_v53 = vmul.f32 %v307_v26, %v46_v48  ;;  %v71_v54 = vmul.f32 %v307_v26, %v44_v46  ;;  %v78_v55 = vmul.f32 %v76_v27, %v45_v47  ;;  %v80_v56 = vmul.f32 %v76_v27, %v43_v45 }
  0x12   :  { %v93_v57 = vmul.f32 %v92_v35, %v32_v29  ;;  %v94_v58 = vmul.f32 %v92_v35, %v33_v30  ;;  %v95_v59 = vmul.f32 %v92_v35, %v34_v31  ;;  %v96_v60 = vmul.f32 %v92_v35, %v35_v32 }
  0x13   :  { %v77_v61 = vmul.f32 %v76_v27, %v69_v53  ;;  %v79_v62 = vmul.f32 %v76_v27, %v71_v54  ;;  %v86_v63 = vadd.f32 %v84_v34, %v78_v55  ;;  %v88_v0 = vadd.f32 %v84_v34, %v80_v56 }
  0x14   :  { %v102_v1 = vmul.f32 %v308_v33, %v53_v50  ;;  %v104_v2 = vmul.f32 %v308_v33, %v55_v52  ;;  %v109_v3 = vmul.f32 %v108_v36, %v54_v51  ;;  %v111_v4 = vmul.f32 %v108_v36, %v52_v49 }
  0x15   :  { %v85_v6 = vadd.f32 %v84_v34, %v77_v61  ;;  %v87_v7 = vadd.f32 %v84_v34, %v79_v62  ;;  %v98_v5 = vadd.f32 %v94_v58, %v86_v63  ;;  %v100_v8 = vadd.f32 %v96_v60, %v88_v0 }
  0x16   :  { %v110_v9 = vmul.f32 %v108_v36, %v102_v1  ;;  %v112_v10 = vmul.f32 %v108_v36, %v104_v2  ;;  %vm161_vm8 = vcmask 162816   ;;  %vm213_vm11 = vcmask 1041409  }
  0x17   :  { %v97_v11 = vadd.f32 %v93_v57, %v85_v6  ;;  %v99_v12 = vadd.f32 %v95_v59, %v87_v7  ;;  %vm291_vm12 = vcmask 33792  }
  0x18   :  { %v114_v13 = vadd.f32 %v110_v9, %v98_v5  ;;  %v116_v14 = vadd.f32 %v112_v10, %v100_v8 }
  0x19   :  { %v113_v15 = vadd.f32 %v109_v3, %v97_v11  ;;  %v115_v16 = vadd.f32 %v111_v4, %v99_v12 }
  0x1a   :  { %v118_v17 = vmin.f32 %v114_v13, 20.0  ;;  %v120_v18 = vmin.f32 %v116_v14, 20.0  ;;  %vm138_vm6 = vcmp.gt.f32.partialorder %v114_v13, 20.0  ;;  %vm140_vm10 = vcmp.gt.f32.partialorder %v116_v14, 20.0 }
  0x1b   :  { %v117_v19 = vmin.f32 %v113_v15, 20.0  ;;  %v119_v20 = vmin.f32 %v115_v16, 20.0  ;;  %vm137_vm7 = vcmp.gt.f32.partialorder %v113_v15, 20.0  ;;  %vm139_vm9 = vcmp.gt.f32.partialorder %v115_v16, 20.0 }
  0x1c   :  { %v123_v21 = vmul.f32 1.442695, %v118_v17  ;;  %v127_v24 = vmul.f32 1.442695, %v120_v18 }
  0x1d   :  { %v121_v22 = vmul.f32 1.442695, %v117_v19  ;;  %v125_v23 = vmul.f32 1.442695, %v119_v20 }
  0x1e   :  { %331 = vpow2.f32 %v123_v21 }
  0x1f   :  { %333 = vpow2.f32 %v121_v22 }
  0x20   :  { %335 = vpow2.f32 %v125_v23 }
  0x21   :  { %337 = vpow2.f32 %v127_v24 }
  0x28   :  { %v332_v25 = vpop.eup %331 }
  0x29   :  { %v334_v26 = vpop.eup %333  ;;  %v130_v27 = vadd.f32 2.0, %v332_v25 }
  0x2a   :  { %v336_v29 = vpop.eup %335  ;;  %v129_v30 = vadd.f32 2.0, %v334_v26 }
  0x2b   :  { %v338_v31 = vpop.eup %337  ;;  %v131_v32 = vadd.f32 2.0, %v336_v29  ;;  %v134_v33 = vmul.f32 %v332_v25, %v130_v27 }
  0x2c   :  { %v132_v34 = vadd.f32 2.0, %v338_v31  ;;  %v133_v35 = vmul.f32 %v334_v26, %v129_v30 }
  0x2d   :  { %v135_v36 = vmul.f32 %v336_v29, %v131_v32  ;;  %v146_v37 = vadd.f32 2.0, %v134_v33  ;;  %v142_v42 = vmul.f32 %v134_v33, %v114_v13 }
  0x2e   :  { %v136_v38 = vmul.f32 %v338_v31, %v132_v34  ;;  %v145_v39 = vadd.f32 2.0, %v133_v35  ;;  %v141_v43 = vmul.f32 %v133_v35, %v113_v15 }
  0x2f   :  { %v147_v40 = vadd.f32 2.0, %v135_v36  ;;  %339 = vrcp.f32 %v146_v37  ;;  %v143_v44 = vmul.f32 %v135_v36, %v115_v16 }
  0x30   :  { %v148_v41 = vadd.f32 2.0, %v136_v38  ;;  %341 = vrcp.f32 %v145_v39  ;;  %v144_v46 = vmul.f32 %v136_v38, %v116_v14 }
  0x31   :  { %343 = vrcp.f32 %v147_v40 }
  0x32   :  { %345 = vrcp.f32 %v148_v41 }
  0x39   :  { %v340_v45 = vpop.eup %339 }
  0x3a   :  { %v342_v47 = vpop.eup %341  ;;  %v154_v48 = vmul.f32 %v340_v45, %v142_v42 }
  0x3b   :  { %v344_v49 = vpop.eup %343  ;;  %v153_v50 = vmul.f32 %v342_v47, %v141_v43 }
  0x3c   :  { %v346_v51 = vpop.eup %345  ;;  %v155_v52 = vmul.f32 %v344_v49, %v143_v44  ;;  %v158_v53 = vsel %vm138_vm6, %v114_v13, %v154_v48 }
  0x3d   :  { %v156_v54 = vmul.f32 %v346_v51, %v144_v46  ;;  %v157_v55 = vsel %vm137_vm7, %v113_v15, %v153_v50  ;;  %v163_v56 = vsel %vm161_vm8, %v158_v53, -inf  ;;  %v181_v57 = vsel %vm161_vm8, %v158_v53, 0.0 }
  0x3e   :  { %v159_v58 = vsel %vm139_vm9, %v115_v16, %v155_v52  ;;  %v162_v59 = vsel %vm161_vm8, %v157_v55, -inf  ;;  %v180_v60 = vsel %vm161_vm8, %v157_v55, 0.0 }
  0x3f   :  { %v160_v61 = vsel %vm140_vm10, %v116_v14, %v156_v54  ;;  %v164_v62 = vmax.f32 %v162_v59, %v163_v56  ;;  %v171_v63 = vsel %vm161_vm8, %v159_v58, -inf  ;;  %v182_v0 = vadd.f32 %v181_v57, %v180_v60 }
  0x40   :  { %v172_v1 = vsel %vm161_vm8, %v160_v61, -inf  ;;  %v189_v2 = vsel %vm161_vm8, %v159_v58, 0.0  ;;  %v190_v3 = vsel %vm161_vm8, %v160_v61, 0.0 }
  0x41   :  { %v165_v4 = vrot.slane %v164_v62, 4  ;;  %v173_v6 = vmax.f32 %v171_v63, %v172_v1  ;;  %v183_v7 = vrot.slane %v182_v0, 4  ;;  %v191_v5 = vadd.f32 %v190_v3, %v189_v2 }
  0x43   :  { %v166_v8 = vmax.f32 %v164_v62, %v165_v4  ;;  %v174_v9 = vrot.slane %v173_v6, 4  ;;  %v184_v10 = vadd.f32 %v183_v7, %v182_v0  ;;  %v192_v11 = vrot.slane %v191_v5, 4 }
  0x45   :  { %v167_v12 = vrot.slane %v166_v8, 2  ;;  %v175_v13 = vmax.f32 %v173_v6, %v174_v9  ;;  %v185_v14 = vrot.slane %v184_v10, 2  ;;  %v193_v15 = vadd.f32 %v192_v11, %v191_v5 }
  0x47   :  { %v168_v16 = vmax.f32 %v166_v8, %v167_v12  ;;  %v176_v17 = vrot.slane %v175_v13, 2  ;;  %v186_v18 = vadd.f32 %v185_v14, %v184_v10  ;;  %v194_v19 = vrot.slane %v193_v15, 2 }
  0x49   :  { %v169_v20 = vrot.slane %v168_v16, 1  ;;  %v177_v21 = vmax.f32 %v175_v13, %v176_v17  ;;  %v187_v22 = vrot.slane %v186_v18, 1  ;;  %v195_v23 = vadd.f32 %v194_v19, %v193_v15 }
  0x4b   :  { %v170_v24 = vmax.f32 %v168_v16, %v169_v20  ;;  %v178_v25 = vrot.slane %v177_v21, 1  ;;  %v188_v26 = vadd.f32 %v187_v22, %v186_v18  ;;  %v196_v27 = vrot.slane %v195_v23, 1 }
  0x4d   :  { %v179_v29 = vmax.f32 %v177_v21, %v178_v25  ;;  %v197_v30 = vadd.f32 %v196_v27, %v195_v23  ;;  %v198_v31 = vmul.f32 0.0625, %v188_v26 }
  0x4f   :  { %v199_v32 = vmul.f32 0.0625, %v197_v30  ;;  %v200_v33 = vadd.f32 %v198_v31, %v170_v24 }
  0x51   :  { %v201_v34 = vadd.f32 %v199_v32, %v179_v29  ;;  %v202_v35 = vmul.f32 0.5, %v200_v33 }
  0x53   :  { %v203_v36 = vmul.f32 0.5, %v201_v34 }
  0x55   :  { %v214_v37 = vsel %vm213_vm11, %v203_v36, %v202_v35 }
  0x56   :  { %322 = vmatmul.mubr.msk.f32.vlgmr.msra.gmra.mrb[0].mxu0 %vm161_vm8, %v214_v37 }
 0x129   :  { %v287_v38 = vpop.f32.mrb[0].mxu0 }
 0x12a   :  { %v288_v39 = vadd.f32 %v287_v38, %v419_v28  ;;  %v323_v40 = vpop.f32.mrb[1].mxu0 }
 0x12c   :  { %292 = vst.msk [vmem:[#allocation2] sm:$0x3] %vm291_vm12, %v288_v39 }
 0x12d   :  { %358 = shalt.err (!%p355_p4)
}
 0x12e   :  { %s359_s30 = scalar_lea.hbm %s455_s3, 32 }
 0x12f   :  { %p360_p5 = scmp.ne.s32.totalorder %s455_s3, %s359_s30  ;;  %p363_p6 = scmp.lt.u32.totalorder %s359_s30, %s455_s3 }
 0x131   :  { %p365_p7 = pnand %p363_p6, %p360_p5 }
 0x133   :  { %368 = shalt.err (!%p365_p7)
}
 0x134   :  { %302 = dma.vmem_to_hbm [thread:$0]  %s300_s2, 32, %s455_s3, [#allocation3]  }
 0x135   :  { %369 = dma.done.wait [#allocation3], 32  }
 0x136   :  { %370 = vsyncadd [#allocation3], 4294967264 }
 0x137   :  { %306 = vsyncpa [#allocation3], 1 }

</bundles_post_ra>
